<compile_context>
chip_gen: v5e
topology: v5e:2x2
jax: 0.10.0
libtpu: 0.0.40
codegen_flags: <defaults>
</compile_context>

<pallas_src>
import functools

import jax
import jax.numpy as jnp
from jax.experimental import pallas as pl
from jax.experimental.pallas import tpu as pltpu


def _round_up(x, m):
    return ((x + m - 1) // m) * m


def _make_gap_head_kernel(w_dtype):
    def _gap_head_kernel(x_ref, w_ref, b_ref, o_ref, acc_ref):
        # x_ref  : (TB, C, TS)  activation tile at native dtype (one spatial slice)
        # w_ref  : (C, Np)      head weight, pre-scaled by 1/(H*W)
        # b_ref  : (1, Np)      f32 bias (lane-dense, zero-padded)
        # o_ref  : (TB, Np)     f32 logits, written only on the last spatial step
        # acc_ref: (TB, C)      f32 running spatial-sum accumulator (scratch)
        si = pl.program_id(1)

        @pl.when(si == 0)
        def _init():
            acc_ref[...] = jnp.zeros_like(acc_ref)

        # per-tile cast (VPU, hidden under the DMA) + cross-lane reduce (XLU)
        acc_ref[...] += jnp.sum(x_ref[...].astype(jnp.float32), axis=-1)

        @pl.when(si == pl.num_programs(1) - 1)
        def _finalize():
            lhs = acc_ref[...].astype(w_dtype)
            logits = jnp.dot(lhs, w_ref[...],
                             preferred_element_type=jnp.float32)
            o_ref[...] = logits + b_ref[...]

    return _gap_head_kernel


def base_network_forward(x_nchw, weight, bias):
    """GAP + linear head.  x_nchw: [B, C, H, W]; weight: [C, N]; bias: [N]."""
    B, C, H, W = x_nchw.shape
    num_classes = weight.shape[1]
    HW = H * W

    # Consume activations at the caller's dtype (no wrapper cast -> no extra
    # HBM round-trip).  Reshape is a free contiguous view.
    x_flat = x_nchw.reshape(B, C, HW)
    in_itemsize = jnp.dtype(x_flat.dtype).itemsize

    # Fold the 1/(H*W) mean scale into the weight; zero-pad N to a lane-dense
    # multiple of 128 so the output store is an unmasked vst.  Large weights
    # are kept bf16-resident (f32 accumulation via preferred_element_type).
    n_pad = _round_up(max(num_classes, 1), 128)
    w_dtype = jnp.bfloat16 if (C * n_pad * 4) > (4 << 20) else jnp.float32
    w_scaled = (weight.astype(jnp.float32) / float(HW)).astype(w_dtype)
    w_p = jnp.zeros((C, n_pad), w_dtype).at[:, :num_classes].set(w_scaled)
    b_p = jnp.zeros((1, n_pad), jnp.float32).at[0, :num_classes].set(
        bias.astype(jnp.float32))
    w_itemsize = jnp.dtype(w_dtype).itemsize

    # ---- generation-aware VMEM budget -----------------------------------
    try:
        vmem_cap = int(pltpu.get_tpu_info().vmem_capacity_bytes)
    except Exception:
        vmem_cap = 64 << 20  # conservative fallback (v7x-sized)
    if vmem_cap >= (96 << 20):          # v5e / v6e: 128 MiB physical VMEM
        budget = 48 << 20
        vmem_limit = 96 << 20
    else:                               # v7x-class: 64 MiB physical VMEM
        budget = 24 << 20
        vmem_limit = 48 << 20

    # ---- tile selection ---------------------------------------------------
    # spatial tile: largest lane-dense multiple of 128 dividing H*W; otherwise
    # keep the full (contiguous per (b, c) row) extent — DMA-friendly either way.
    ts = HW
    for cand in (4096, 2048, 1024, 512, 256, 128):
        if HW % cand == 0:
            ts = cand
            break

    # batch tile: divisors of B that keep the (tb, n_pad) output block legal
    # (multiple of 8, or B itself).  Prefer B//tb >= 2 so v7x's two
    # TensorCores both get work along the "parallel" axis.
    legal_tbs = sorted({d for d in range(8, B + 1, 8) if B % d == 0} | {B})
    par_tbs = [t for t in legal_tbs if B // t >= 2]
    tb = max(par_tbs) if par_tbs else max(legal_tbs)
    # TODO(synk): for tiny B (< 16) on v7x one TC idles; padding the batch
    #             would trade extra HBM traffic for core parallelism.

    C_sub = _round_up(C, 8)  # sublane-padded channel extent in VMEM tiles

    def blocks_bytes(tb_, ts_):
        ts_pad = _round_up(ts_, 128)
        x_blk = 2 * tb_ * C_sub * ts_pad * in_itemsize        # double-buffered input
        w_blk = 2 * C_sub * n_pad * w_itemsize                # resident weight
        b_blk = 2 * 8 * n_pad * 4                             # bias
        o_blk = 2 * _round_up(tb_, 8) * n_pad * 4             # output block
        acc = _round_up(tb_, 8) * _round_up(C, 128) * 4       # f32 accumulator
        return x_blk + w_blk + b_blk + o_blk + acc

    # Clamp: shrink the batch tile through legal divisors first, then halve
    # the spatial tile (staying a multiple of 128 that still divides H*W).
    while blocks_bytes(tb, ts) > budget:
        smaller = [t for t in legal_tbs if t < tb]
        if smaller:
            tb = max(smaller)
        elif ts > 128 and ts % 256 == 0:
            ts //= 2
        else:
            break  # smallest legal tiling; rely on vmem_limit headroom
    # TODO(synk): very large heads (C * n_pad f32 >> budget) would need an
    #             N-tiling grid axis for the weight/bias/output.

    grid = (B // tb, HW // ts)  # (parallel batch axis, reduction axis last)

    cost = pl.CostEstimate(
        flops=B * C * HW + 2 * B * C * n_pad,
        transcendentals=0,
        bytes_accessed=(B * C * HW * in_itemsize
                        + C * n_pad * w_itemsize + n_pad * 4 + B * n_pad * 4),
    )

    kernel = _make_gap_head_kernel(w_dtype)

    out_padded = pl.pallas_call(
        kernel,
        out_shape=jax.ShapeDtypeStruct((B, n_pad), jnp.float32),
        grid_spec=pltpu.PrefetchScalarGridSpec(
            num_scalar_prefetch=0,
            grid=grid,
            in_specs=[
                pl.BlockSpec((tb, C, ts), lambda bi, si: (bi, 0, si)),
                pl.BlockSpec((C, n_pad), lambda bi, si: (0, 0)),
                pl.BlockSpec((1, n_pad), lambda bi, si: (0, 0)),
            ],
            out_specs=pl.BlockSpec((tb, n_pad), lambda bi, si: (bi, 0)),
            scratch_shapes=[pltpu.VMEM((tb, C), jnp.float32)],
        ),
        compiler_params=pltpu.CompilerParams(
            dimension_semantics=("parallel", "arbitrary"),
            vmem_limit_bytes=vmem_limit,
        ),
        cost_estimate=cost,
    )(x_flat, w_p, b_p)

    return out_padded[:, :num_classes]


if __name__ == "__main__":
    key = jax.random.PRNGKey(0)
    kx, kw, kb = jax.random.split(key, 3)

    B, C, H, W = 2, 4, 16, 16
    num_classes = 10

    x = jax.random.normal(kx, (B, C, H, W), dtype=jnp.float32)
    # deterministic parameter init (synthetic; no checkpoint load)
    weight = jax.random.normal(kw, (C, num_classes), dtype=jnp.float32) * 0.1
    bias = jax.random.normal(kb, (num_classes,), dtype=jnp.float32) * 0.01

    out = jax.block_until_ready(base_network_forward(x, weight, bias))

    # f32 reference (kernel now consumes f32 natively, no bf16 downcast)
    ref = x.reshape(B, C, H * W).mean(-1) @ weight + bias

    assert out.shape == (B, num_classes)
    assert jnp.allclose(out, ref, atol=1e-3, rtol=1e-3), "mismatch vs reference"

    print("KERNEL_OK")
</pallas_src>

<mosaic_0001>
module attributes {stable_mosaic.version = 11 : i64} {
  func.func @_gap_head_kernel(%arg0: i32, %arg1: i32, %arg2: memref<2x4x256xf32, #tpu.memory_space<vmem>>, %arg3: memref<4x128xf32, #tpu.memory_space<vmem>>, %arg4: memref<1x128xf32, #tpu.memory_space<vmem>>, %arg5: memref<2x128xf32, #tpu.memory_space<vmem>>, %arg6: memref<2x4xf32, #tpu.memory_space<vmem>>) attributes {dimension_semantics = [#tpu.dimension_semantics<parallel>, #tpu.dimension_semantics<arbitrary>], iteration_bounds = array<i64: 1, 1>, scalar_prefetch = 0 : i64, scratch_operands = 1 : i64, tpu.core_type = #tpu.core_type<tc>, window_params = [{transform_indices = @transform_0, window_bounds = array<i64: 2, 4, 256>}, {pipeline_mode = #tpu.pipeline_mode<synchronous>, transform_indices = @transform_1, window_bounds = array<i64: 4, 128>}, {pipeline_mode = #tpu.pipeline_mode<synchronous>, transform_indices = @transform_2, window_bounds = array<i64: 1, 128>}, {transform_indices = @transform_3, window_bounds = array<i64: 2, 128>}]} {
    %c0_i32 = arith.constant 0 : i32
    %0 = arith.cmpi eq, %arg1, %c0_i32 : i32
    %1 = arith.extui %0 : i1 to i32
    %c0_i32_0 = arith.constant 0 : i32
    %2 = arith.cmpi ne, %1, %c0_i32_0 : i32
    scf.if %2 {
      %cst_9 = arith.constant 0.000000e+00 : f32
      %11 = vector.broadcast %cst_9 : f32 to vector<2x4xf32>
      %c0_10 = arith.constant 0 : index
      %c0_11 = arith.constant 0 : index
      %12 = vector.load %arg6[%c0_10, %c0_11] : memref<2x4xf32, #tpu.memory_space<vmem>>, vector<2x4xf32>
      tpu.vector_store %arg6[%c0_10, %c0_11], %11 {strides = array<i32>} : memref<2x4xf32, #tpu.memory_space<vmem>>, vector<2x4xf32>,
    } else {
    }
    %c0 = arith.constant 0 : index
    %c0_1 = arith.constant 0 : index
    %3 = vector.load %arg6[%c0, %c0_1] : memref<2x4xf32, #tpu.memory_space<vmem>>, vector<2x4xf32>
    %c0_2 = arith.constant 0 : index
    %c0_3 = arith.constant 0 : index
    %c0_4 = arith.constant 0 : index
    %4 = vector.load %arg2[%c0_2, %c0_3, %c0_4] : memref<2x4x256xf32, #tpu.memory_space<vmem>>, vector<2x4x256xf32>
    %cst = arith.constant dense<0.000000e+00> : vector<2x4xf32>
    %5 = vector.multi_reduction <add>, %4, %cst [2] : vector<2x4x256xf32> to vector<2x4xf32>
    %6 = arith.addf %3, %5 : vector<2x4xf32>
    %c0_5 = arith.constant 0 : index
    %c0_6 = arith.constant 0 : index
    %7 = vector.load %arg6[%c0_5, %c0_6] : memref<2x4xf32, #tpu.memory_space<vmem>>, vector<2x4xf32>
    tpu.vector_store %arg6[%c0_5, %c0_6], %6 {strides = array<i32>} : memref<2x4xf32, #tpu.memory_space<vmem>>, vector<2x4xf32>,
    %c0_i32_7 = arith.constant 0 : i32
    %8 = arith.cmpi eq, %arg1, %c0_i32_7 : i32
    %9 = arith.extui %8 : i1 to i32
    %c0_i32_8 = arith.constant 0 : i32
    %10 = arith.cmpi ne, %9, %c0_i32_8 : i32
    scf.if %10 {
      %c0_9 = arith.constant 0 : index
      %c0_10 = arith.constant 0 : index
      %11 = vector.load %arg6[%c0_9, %c0_10] : memref<2x4xf32, #tpu.memory_space<vmem>>, vector<2x4xf32>
      %c0_11 = arith.constant 0 : index
      %c0_12 = arith.constant 0 : index
      %12 = vector.load %arg3[%c0_11, %c0_12] : memref<4x128xf32, #tpu.memory_space<vmem>>, vector<4x128xf32>
      %cst_13 = arith.constant dense<0.000000e+00> : vector<2x128xf32>
      %13 = tpu.matmul %11, %12, %cst_13 {dimension_numbers = #tpu.dot_dimension_numbers<[1], [0], [0], [1], [0, 0, 1, 1], [], []>} : vector<2x4xf32>, vector<4x128xf32>, vector<2x128xf32> -> vector<2x128xf32>
      %c0_14 = arith.constant 0 : index
      %c0_15 = arith.constant 0 : index
      %14 = vector.load %arg4[%c0_14, %c0_15] : memref<1x128xf32, #tpu.memory_space<vmem>>, vector<1x128xf32>
      %15 = vector.broadcast %14 : vector<1x128xf32> to vector<2x128xf32>
      %16 = arith.addf %13, %15 : vector<2x128xf32>
      %c0_16 = arith.constant 0 : index
      %c0_17 = arith.constant 0 : index
      %17 = vector.load %arg5[%c0_16, %c0_17] : memref<2x128xf32, #tpu.memory_space<vmem>>, vector<2x128xf32>
      tpu.vector_store %arg5[%c0_16, %c0_17], %16 {strides = array<i32>} : memref<2x128xf32, #tpu.memory_space<vmem>>, vector<2x128xf32>,
    } else {
    }
    return
  }
  func.func @transform_0(%arg0: i32, %arg1: i32) -> (i32, i32, i32) {
    %c0_i32 = arith.constant 0 : i32
    %c0_i32_0 = arith.constant 0 : i32
    return %arg0, %c0_i32, %arg1 : i32, i32, i32
  }
  func.func @transform_1(%arg0: i32, %arg1: i32) -> (i32, i32) {
    %c0_i32 = arith.constant 0 : i32
    %c0_i32_0 = arith.constant 0 : i32
    %c0_i32_1 = arith.constant 0 : i32
    return %c0_i32, %c0_i32_0 : i32, i32
  }
  func.func @transform_2(%arg0: i32, %arg1: i32) -> (i32, i32) {
    %c0_i32 = arith.constant 0 : i32
    %c0_i32_0 = arith.constant 0 : i32
    %c0_i32_1 = arith.constant 0 : i32
    return %c0_i32, %c0_i32_0 : i32, i32
  }
  func.func @transform_3(%arg0: i32, %arg1: i32) -> (i32, i32) {
    %c0_i32 = arith.constant 0 : i32
    %c0_i32_0 = arith.constant 0 : i32
    return %arg0, %c0_i32 : i32, i32
  }
}

</mosaic_0001>

<bundles_post_ra>
// kernel: tpu_custom_call.1
= control target key start
LH: loop header
LB: loop body
LE: loop exit
PB: predicated region body
PF: predicated region fallthrough
CT: control target
= control target key end

     0   :  { %8 = vsyncpa [#allocation4], 0  ;;  %s275_s0 = inlined_call_operand.hbm [shape: f32[2,4,256], index: 0, kind: input, shape index: {}]   ;;  %s276_s1 = inlined_call_operand.hbm [shape: f32[4,128], index: 1, kind: input, shape index: {}]   ;;  %s277_s2 = inlined_call_operand.vmem [shape: f32[1,128], index: 2, kind: input, shape index: {}]   ;;  %s278_s3 = inlined_call_operand.hbm [shape: f32[2,128], index: 3, kind: output, shape index: {}]  }
   0x1   :  { %9 = vsyncpa [#allocation7], 0 }
   0x2   :  { %10 = vsyncpa [#allocation5], 0  ;;  %s15_s14 = sshll.u32 %s275_s0, 4  ;;  %s232_s15 = smov [#allocation3]   ;;  %s16_s14 = int_to_ptr.hbm [resolvable:$true] %s15_s14 }
   0x3   :  { %s17_s16 = sshll.u32 %s232_s15, 4  ;;  %s29_s19 = sshll.u32 %s276_s1, 4  ;;  %s18_s16 = int_to_ptr.vmem [resolvable:$true] %s17_s16  ;;  %s30_s19 = int_to_ptr.hbm [resolvable:$true] %s29_s19 }
   0x4   :  { %s233_s20 = smov 128   ;;  %s234_s21 = smov 8  }
   0x5   :  { %23 = dma.hbm_to_vmem [thread:$0]  %s16_s14, 256, %s18_s16, [#allocation4], %s233_s20, %s233_s20, %s234_s21  }
   0x6   :  { %s235_s22 = smov [#allocation6]  }
   0x7   :  { %s31_s23 = sshll.u32 %s235_s22, 4  ;;  %s32_s23 = int_to_ptr.vmem [resolvable:$true] %s31_s23 }
   0x8   :  { %34 = dma.hbm_to_vmem [thread:$0]  %s30_s19, 64, %s32_s23, [#allocation7]  }
   0x9   :  { %226 = dma.done.wait [#allocation4], 256  }
   0xa   :  { %227 = vsyncadd [#allocation4], 4294967040 }
   0xb   :  { %228 = dma.done.wait [#allocation7], 64  }
   0xc   :  { %229 = vsyncadd [#allocation7], 4294967232  ;;  %v52_v0 = vld [vmem:[#allocation3] sm:$0xff]  ;;  %v53_v1 = vld [vmem:[#allocation3 + $0x8] sm:$0xff]  ;;  %vm67_vm0 = vcmask 1043456   ;;  %vm49_vm1 = vcmask 25600   ;;  %v80_v15 = vlaneseq }
   0xd   :  { %56 = vst [vmem:[#allocation1] ss:$2 sm:$0xff] %v52_v0  ;;  %v236_v12 = vmov 0.0   ;;  %v94_v13 = vld [vmem:[#allocation6] sm:$0xf]  ;;  %vm84_vm2 = vcmask 1041409  }
   0xe   :  { %60 = vst [vmem:[#allocation1 + $0x10] ss:$2 sm:$0xff] %v53_v1  ;;  %145 = vmatpush.msk.msra.mxu0 %vm67_vm0, %v94_v13  ;;  %v81_v16 = vand.u32 127, %v80_v15  ;;  %vm99_vm3 = vcmask 31744   ;;  %v153_v24 = vld [vmem:[%s277_s2] ss:$0 sm:$0xff] }
   0xf   :  { %50 = vst.msk [vmem:[#allocation2] sm:$0x3] %vm49_vm1, %v236_v12  ;;  %s237_s24 = smov [#allocation8]   ;;  %s134_s28 = sshll.u32 %s278_s3, 4  ;;  %s135_s28 = int_to_ptr.hbm [resolvable:$true] %s134_s28 }
  0x10   :  { %s132_s25 = sshll.u32 %s237_s24, 4  ;;  %s133_s25 = int_to_ptr.vmem [resolvable:$true] %s132_s25 }
  0x14   :  { %v57_v2 = vld.sshfl [vmem:[#allocation1] sm:$0xff pattern:$0x75316420]  ;;  %v58_v3 = vld.sshfl [vmem:[#allocation1 + $0x8] sm:$0xff pattern:$0x75316420] }
  0x15   :  { %v68_v4 = vsel %vm67_vm0, %v57_v2, 0.0  ;;  %v69_v5 = vsel %vm67_vm0, %v58_v3, 0.0  ;;  %v61_v7 = vld.sshfl [vmem:[#allocation1 + $0x10] sm:$0xff pattern:$0x75316420] }
  0x16   :  { %v70_v6 = vadd.f32 %v69_v5, %v68_v4  ;;  %v62_v8 = vld.sshfl [vmem:[#allocation1 + $0x18] sm:$0xff pattern:$0x75316420]  ;;  %v73_v9 = vsel %vm67_vm0, %v61_v7, 0.0  ;;  %v51_v19 = vld [vmem:[#allocation2] sm:$0x3] }
  0x17   :  { %v74_v10 = vsel %vm67_vm0, %v62_v8, 0.0 }
  0x18   :  { %71 = vadd.xlane.f32.xlu0 %v70_v6  ;;  %v75_v11 = vadd.f32 %v74_v10, %v73_v9 }
  0x20   :  { %76 = vadd.xlane.f32.xlu0 %v75_v11 }
  0x8b   :  { %v72_v14 = vpop.xlane.xlu0 %71 }
  0x8c   :  { %v82_v18 = vperm.slane %v72_v14, %v81_v16 }
  0x93   :  { %v77_v17 = vpop.xlane.xlu0 %76 }
  0x94   :  { %v83_v20 = vperm.slane %v77_v17, %v81_v16 }
  0x96   :  { %v85_v21 = vsel %vm84_vm2, %v83_v20, %v82_v18 }
  0x97   :  { %v87_v22 = vadd.f32 %v85_v21, %v51_v19 }
  0x99   :  { %89 = vst.msk [vmem:[#allocation2] sm:$0x3] %vm49_vm1, %v87_v22 }
  0xa0   :  { %v93_v23 = vld [vmem:[#allocation2] sm:$0x3] }
  0xa1   :  { %146 = vmatmul.msk.f32.vlgmr.msra.gmra.mxu0 %vm99_vm3, %v93_v23 }
 0x11e   :  { %v123_v25 = vpop.f32.mrf.mxu0 }
 0x11f   :  { %v124_v26 = vadd.f32 %v153_v24, %v123_v25 }
 0x121   :  { %126 = vst [vmem:[#allocation8] sm:$0x3] %v124_v26 }
 0x122   :  { %137 = dma.vmem_to_hbm [thread:$0]  %s133_s25, 32, %s135_s28, [#allocation5]  }
 0x123   :  { %230 = dma.done.wait [#allocation5], 32  }
 0x124   :  { %231 = vsyncadd [#allocation5], 4294967264 }
 0x125   :  { %142 = vsyncpa [#allocation4], 1 }
 0x126   :  { %143 = vsyncpa [#allocation7], 1 }
 0x127   :  { %144 = vsyncpa [#allocation5], 1 }

</bundles_post_ra>
